<compile_context>
chip_gen: v7x
topology: tpu7x:2x2x1
jax: 0.10.0
libtpu: 0.0.40
codegen_flags: <defaults>
</compile_context>

<pallas_src>
import functools

import jax
import jax.numpy as jnp
from jax.experimental import pallas as pl
from jax.experimental.pallas import tpu as pltpu


def _drrnn_kernel(x_ref, w0_ref, b0_ref, w1s_ref, b1s_ref, w2s_ref, b2s_ref,
                  wf_ref, bf_ref, o_ref, *, depth, chunk):
    # x_ref: (in_N, tb) f32, batch on the lane axis.
    x = x_ref[...]
    wdt = w0_ref.dtype                      # matmul operand dtype (bf16 or f32)

    # torch.chunk(x, 3, dim=1) -> lane-dense rows in the transposed layout.
    data_x = x[0 * chunk:1 * chunk, :]
    data_y = x[1 * chunk:2 * chunk, :]
    data_z = x[2 * chunk:3 * chunk, :]

    # stack[0]: Linear(in_N, m)  ->  h = W0 @ x + b0, shape (m, tb), f32 acc.
    h = jnp.dot(w0_ref[...], x.astype(wdt),
                preferred_element_type=jnp.float32) + b0_ref[...]

    # stack[1..depth]: Block(m, m, m)  ->  tanh(L2(tanh(L1(h)))) + h
    # depth is small; Python unroll keeps full scheduler visibility.
    for d in range(depth):
        t = jnp.tanh(jnp.dot(w1s_ref[d], h.astype(wdt),
                             preferred_element_type=jnp.float32) + b1s_ref[d])
        t = jnp.tanh(jnp.dot(w2s_ref[d], t.astype(wdt),
                             preferred_element_type=jnp.float32) + b2s_ref[d])
        h = t + h

    # stack[-1]: Linear(m, out_N)  ->  (out_N, tb)
    y = jnp.dot(wf_ref[...], h.astype(wdt),
                preferred_element_type=jnp.float32) + bf_ref[...]

    # Boundary factors + 1 (all lane-dense rows), lane-dense unmasked store.
    o_ref[...] = (y * data_x * data_y * data_z
                  * (1.0 - data_x) * (1.0 - data_y) + 1.0)


def init_params(key, in_N, m, depth, out_N):
    """PyTorch-style Linear init; weights (out_features, in_features),
    biases (out_features, 1) columns (broadcast over the lane/batch axis)."""
    def lin(k, fi, fo):
        kw, kb = jax.random.split(k)
        bound = 1.0 / jnp.sqrt(jnp.float32(fi))
        w = jax.random.uniform(kw, (fo, fi), jnp.float32, -bound, bound)
        b = jax.random.uniform(kb, (fo, 1), jnp.float32, -bound, bound)
        return w, b

    keys = jax.random.split(key, 2 + 2 * depth)
    w0, b0 = lin(keys[0], in_N, m)
    w1s, b1s, w2s, b2s = [], [], [], []
    for d in range(depth):
        w1, b1 = lin(keys[1 + 2 * d], m, m)
        w2, b2 = lin(keys[2 + 2 * d], m, m)
        w1s.append(w1); b1s.append(b1); w2s.append(w2); b2s.append(b2)
    wf, bf = lin(keys[-1], m, out_N)
    return dict(
        w0=w0, b0=b0,
        w1s=jnp.stack(w1s), b1s=jnp.stack(b1s),   # (depth, m, m), (depth, m, 1)
        w2s=jnp.stack(w2s), b2s=jnp.stack(b2s),
        wf=wf, bf=bf,
    )


def drrnn_t_forward(x, params, *, depth, tb=2048, matmul_dtype=jnp.bfloat16):
    """x: (B, in_N) f32.  Returns (B, out_dim) matching the PyTorch forward."""
    B, in_N = x.shape
    m = params["w0"].shape[0]
    out_N = params["wf"].shape[0]

    # torch.chunk(x, 3, 1) equal-width semantics + broadcastability of the
    # final product.
    assert in_N % 3 == 0, "in_N must be divisible by 3 (torch.chunk equal chunks)"
    c = in_N // 3
    assert out_N == c or out_N == 1 or c == 1, "out_N must broadcast with chunk width"
    o_rows = max(out_N, c)

    # Fixed, moderate lane tile: 128-aligned, clamped to [128, 4096] so VMEM /
    # vreg pressure is independent of B (v7x-safe) and the grid has many
    # "parallel" steps for pipelining + both-TC utilization.  Never larger
    # than the (128-rounded) batch to avoid gratuitous padding at small B.
    tb = max(128, (min(int(tb), 4096) // 128) * 128)
    tb = min(tb, pl.cdiv(B, 128) * 128)
    grid = pl.cdiv(B, tb)
    Bp = grid * tb

    # Pad (if needed) + transpose in one wrapper pass.  Padded rows are zeros
    # -> they compute the harmless value 1 and get sliced off below.
    x_pad = jnp.pad(x, ((0, Bp - B), (0, 0))) if Bp != B else x
    x_t = x_pad.T                                               # (in_N, Bp)

    # bf16 MXU operands by default (single-pass MXU path on v5e/v6e/v7x);
    # weights are cast once here, activations per-dot in the kernel, and
    # accumulation / tanh / elementwise stay f32.
    wdt = matmul_dtype
    w0 = params["w0"].astype(wdt)
    w1s = params["w1s"].astype(wdt)
    w2s = params["w2s"].astype(wdt)
    wf = params["wf"].astype(wdt)

    kernel = functools.partial(_drrnn_kernel, depth=depth, chunk=c)

    def full(a):
        return pl.BlockSpec(a.shape, lambda i: (0,) * a.ndim)

    grid_spec = pltpu.PrefetchScalarGridSpec(
        num_scalar_prefetch=0,
        grid=(grid,),
        in_specs=[
            pl.BlockSpec((in_N, tb), lambda i: (0, i)),        # x tile (lanes=batch)
            full(w0), full(params["b0"]),
            full(w1s), full(params["b1s"]),
            full(w2s), full(params["b2s"]),
            full(wf), full(params["bf"]),
        ],
        out_specs=pl.BlockSpec((o_rows, tb), lambda i: (0, i)),  # lane-dense store
    )

    # Advisory cost hint for XLA scheduling around the custom call.
    flops = 2 * Bp * (in_N * m + 2 * depth * m * m + m * out_N)
    transcendentals = 2 * depth * m * Bp
    weight_bytes = int(sum(v.size for v in params.values()) * 4)
    cost = pl.CostEstimate(
        flops=flops,
        transcendentals=transcendentals,
        bytes_accessed=4 * Bp * (in_N + o_rows) + weight_bytes,
    )

    out_t = pl.pallas_call(
        kernel,
        out_shape=jax.ShapeDtypeStruct((o_rows, Bp), jnp.float32),
        grid_spec=grid_spec,
        compiler_params=pltpu.CompilerParams(
            dimension_semantics=("parallel",)),
        cost_estimate=cost,
    )(x_t, w0, params["b0"],
      w1s, params["b1s"], w2s, params["b2s"],
      wf, params["bf"])

    # Slice off padding + transpose back (single fused wrapper pass).
    return out_t[:, :B].T                                       # (B, o_rows)


def drrnn_t_reference(x, params, *, depth):
    """Pure-JAX f32 reference mirroring the PyTorch forward (batch-first)."""
    in_N = x.shape[1]
    c = in_N // 3
    dx, dy, dz = x[:, 0:c], x[:, c:2 * c], x[:, 2 * c:3 * c]
    h = x @ params["w0"].T + params["b0"][:, 0]
    for d in range(depth):
        t = jnp.tanh(h @ params["w1s"][d].T + params["b1s"][d][:, 0])
        t = jnp.tanh(t @ params["w2s"][d].T + params["b2s"][d][:, 0])
        h = t + h
    y = h @ params["wf"].T + params["bf"][:, 0]
    return y * dx * dy * dz * (1 - dx) * (1 - dy) + 1


if __name__ == "__main__":
    # Module-consistent small shapes: x in R^3 (x, y, t), hidden width m,
    # a few residual blocks, scalar output.
    in_N, m, depth, out_N = 3, 32, 3, 1
    B = 256

    key = jax.random.PRNGKey(0)
    k_params, k_x = jax.random.split(key)
    params = init_params(k_params, in_N, m, depth, out_N)
    x = jax.random.uniform(k_x, (B, in_N), jnp.float32)        # points in [0,1]^3
    ref = drrnn_t_reference(x, params, depth=depth)

    # Default path: bf16 MXU operands, f32 accumulation + f32 tanh/elementwise.
    out = jax.block_until_ready(drrnn_t_forward(x, params, depth=depth))
    assert out.shape == (B, out_N)
    assert jnp.allclose(out, ref, atol=2e-2, rtol=2e-2), (
        float(jnp.max(jnp.abs(out - ref))))

    # Multi-step grid + padded odd batch (exercises pipelined path + padding).
    B2 = 300
    x2 = jax.random.uniform(jax.random.PRNGKey(1), (B2, in_N), jnp.float32)
    ref2 = drrnn_t_reference(x2, params, depth=depth)
    out2 = jax.block_until_ready(
        drrnn_t_forward(x2, params, depth=depth, tb=128))
    assert out2.shape == (B2, out_N)
    assert jnp.allclose(out2, ref2, atol=2e-2, rtol=2e-2), (
        float(jnp.max(jnp.abs(out2 - ref2))))

    # f32-operand MXU path (note: without an explicit precision this is the
    # TPU default matmul precision, same as the reference's own matmuls).
    out_f32 = jax.block_until_ready(
        drrnn_t_forward(x, params, depth=depth, matmul_dtype=jnp.float32))
    assert out_f32.shape == (B, out_N)
    assert jnp.allclose(out_f32, ref, atol=2e-2, rtol=2e-2), (
        float(jnp.max(jnp.abs(out_f32 - ref))))

    print("KERNEL_OK")
</pallas_src>

<mosaic_0001>
module attributes {stable_mosaic.version = 11 : i64} {
  func.func @_drrnn_kernel(%arg0: i32, %arg1: memref<3x256xf32, #tpu.memory_space<vmem>>, %arg2: memref<32x3xbf16, #tpu.memory_space<vmem>>, %arg3: memref<32x1xf32, #tpu.memory_space<vmem>>, %arg4: memref<3x32x32xbf16, #tpu.memory_space<vmem>>, %arg5: memref<3x32x1xf32, #tpu.memory_space<vmem>>, %arg6: memref<3x32x32xbf16, #tpu.memory_space<vmem>>, %arg7: memref<3x32x1xf32, #tpu.memory_space<vmem>>, %arg8: memref<1x32xbf16, #tpu.memory_space<vmem>>, %arg9: memref<1x1xf32, #tpu.memory_space<vmem>>, %arg10: memref<1x256xf32, #tpu.memory_space<vmem>>) attributes {dimension_semantics = [#tpu.dimension_semantics<parallel>], iteration_bounds = array<i64: 1>, scalar_prefetch = 0 : i64, scratch_operands = 0 : i64, tpu.core_type = #tpu.core_type<tc>, window_params = [{transform_indices = @transform_0, window_bounds = array<i64: 3, 256>}, {pipeline_mode = #tpu.pipeline_mode<synchronous>, transform_indices = @transform_1, window_bounds = array<i64: 32, 3>}, {pipeline_mode = #tpu.pipeline_mode<synchronous>, transform_indices = @transform_2, window_bounds = array<i64: 32, 1>}, {pipeline_mode = #tpu.pipeline_mode<synchronous>, transform_indices = @transform_3, window_bounds = array<i64: 3, 32, 32>}, {pipeline_mode = #tpu.pipeline_mode<synchronous>, transform_indices = @transform_4, window_bounds = array<i64: 3, 32, 1>}, {pipeline_mode = #tpu.pipeline_mode<synchronous>, transform_indices = @transform_5, window_bounds = array<i64: 3, 32, 32>}, {pipeline_mode = #tpu.pipeline_mode<synchronous>, transform_indices = @transform_6, window_bounds = array<i64: 3, 32, 1>}, {pipeline_mode = #tpu.pipeline_mode<synchronous>, transform_indices = @transform_7, window_bounds = array<i64: 1, 32>}, {pipeline_mode = #tpu.pipeline_mode<synchronous>, transform_indices = @transform_8, window_bounds = array<i64: 1, 1>}, {transform_indices = @transform_9, window_bounds = array<i64: 1, 256>}]} {
    %c0 = arith.constant 0 : index
    %c0_0 = arith.constant 0 : index
    %0 = vector.load %arg1[%c0, %c0_0] : memref<3x256xf32, #tpu.memory_space<vmem>>, vector<3x256xf32>
    %1 = vector.extract_strided_slice %0 {offsets = [0, 0], sizes = [1, 256], strides = [1, 1]} : vector<3x256xf32> to vector<1x256xf32>
    %2 = vector.extract_strided_slice %0 {offsets = [1, 0], sizes = [1, 256], strides = [1, 1]} : vector<3x256xf32> to vector<1x256xf32>
    %3 = vector.extract_strided_slice %0 {offsets = [2, 0], sizes = [1, 256], strides = [1, 1]} : vector<3x256xf32> to vector<1x256xf32>
    %c0_1 = arith.constant 0 : index
    %c0_2 = arith.constant 0 : index
    %4 = vector.load %arg2[%c0_1, %c0_2] : memref<32x3xbf16, #tpu.memory_space<vmem>>, vector<32x3xbf16>
    %5 = arith.truncf %0 : vector<3x256xf32> to vector<3x256xbf16>
    %cst = arith.constant dense<0.000000e+00> : vector<32x256xf32>
    %6 = tpu.matmul %4, %5, %cst {dimension_numbers = #tpu.dot_dimension_numbers<[1], [0], [0], [1], [0, 0, 1, 1], [], []>} : vector<32x3xbf16>, vector<3x256xbf16>, vector<32x256xf32> -> vector<32x256xf32>
    %c0_3 = arith.constant 0 : index
    %c0_4 = arith.constant 0 : index
    %7 = vector.load %arg3[%c0_3, %c0_4] : memref<32x1xf32, #tpu.memory_space<vmem>>, vector<32x1xf32>
    %8 = vector.broadcast %7 : vector<32x1xf32> to vector<32x256xf32>
    %9 = arith.addf %6, %8 : vector<32x256xf32>
    %c0_5 = arith.constant 0 : index
    %c0_6 = arith.constant 0 : index
    %c0_7 = arith.constant 0 : index
    %10 = vector.load %arg4[%c0_5, %c0_6, %c0_7] : memref<3x32x32xbf16, #tpu.memory_space<vmem>>, vector<1x32x32xbf16>
    %11 = vector.shape_cast %10 : vector<1x32x32xbf16> to vector<32x32xbf16>
    %12 = arith.truncf %9 : vector<32x256xf32> to vector<32x256xbf16>
    %cst_8 = arith.constant dense<0.000000e+00> : vector<32x256xf32>
    %13 = tpu.matmul %11, %12, %cst_8 {dimension_numbers = #tpu.dot_dimension_numbers<[1], [0], [0], [1], [0, 0, 1, 1], [], []>} : vector<32x32xbf16>, vector<32x256xbf16>, vector<32x256xf32> -> vector<32x256xf32>
    %c0_9 = arith.constant 0 : index
    %c0_10 = arith.constant 0 : index
    %c0_11 = arith.constant 0 : index
    %14 = vector.load %arg5[%c0_9, %c0_10, %c0_11] : memref<3x32x1xf32, #tpu.memory_space<vmem>>, vector<1x32x1xf32>
    %15 = vector.shape_cast %14 : vector<1x32x1xf32> to vector<32x1xf32>
    %16 = vector.broadcast %15 : vector<32x1xf32> to vector<32x256xf32>
    %17 = arith.addf %13, %16 : vector<32x256xf32>
    %18 = math.tanh %17 : vector<32x256xf32>
    %c0_12 = arith.constant 0 : index
    %c0_13 = arith.constant 0 : index
    %c0_14 = arith.constant 0 : index
    %19 = vector.load %arg6[%c0_12, %c0_13, %c0_14] : memref<3x32x32xbf16, #tpu.memory_space<vmem>>, vector<1x32x32xbf16>
    %20 = vector.shape_cast %19 : vector<1x32x32xbf16> to vector<32x32xbf16>
    %21 = arith.truncf %18 : vector<32x256xf32> to vector<32x256xbf16>
    %cst_15 = arith.constant dense<0.000000e+00> : vector<32x256xf32>
    %22 = tpu.matmul %20, %21, %cst_15 {dimension_numbers = #tpu.dot_dimension_numbers<[1], [0], [0], [1], [0, 0, 1, 1], [], []>} : vector<32x32xbf16>, vector<32x256xbf16>, vector<32x256xf32> -> vector<32x256xf32>
    %c0_16 = arith.constant 0 : index
    %c0_17 = arith.constant 0 : index
    %c0_18 = arith.constant 0 : index
    %23 = vector.load %arg7[%c0_16, %c0_17, %c0_18] : memref<3x32x1xf32, #tpu.memory_space<vmem>>, vector<1x32x1xf32>
    %24 = vector.shape_cast %23 : vector<1x32x1xf32> to vector<32x1xf32>
    %25 = vector.broadcast %24 : vector<32x1xf32> to vector<32x256xf32>
    %26 = arith.addf %22, %25 : vector<32x256xf32>
    %27 = math.tanh %26 : vector<32x256xf32>
    %28 = arith.addf %27, %9 : vector<32x256xf32>
    %c1 = arith.constant 1 : index
    %c0_19 = arith.constant 0 : index
    %c0_20 = arith.constant 0 : index
    %29 = vector.load %arg4[%c1, %c0_19, %c0_20] : memref<3x32x32xbf16, #tpu.memory_space<vmem>>, vector<1x32x32xbf16>
    %30 = vector.shape_cast %29 : vector<1x32x32xbf16> to vector<32x32xbf16>
    %31 = arith.truncf %28 : vector<32x256xf32> to vector<32x256xbf16>
    %cst_21 = arith.constant dense<0.000000e+00> : vector<32x256xf32>
    %32 = tpu.matmul %30, %31, %cst_21 {dimension_numbers = #tpu.dot_dimension_numbers<[1], [0], [0], [1], [0, 0, 1, 1], [], []>} : vector<32x32xbf16>, vector<32x256xbf16>, vector<32x256xf32> -> vector<32x256xf32>
    %c1_22 = arith.constant 1 : index
    %c0_23 = arith.constant 0 : index
    %c0_24 = arith.constant 0 : index
    %33 = vector.load %arg5[%c1_22, %c0_23, %c0_24] : memref<3x32x1xf32, #tpu.memory_space<vmem>>, vector<1x32x1xf32>
    %34 = vector.shape_cast %33 : vector<1x32x1xf32> to vector<32x1xf32>
    %35 = vector.broadcast %34 : vector<32x1xf32> to vector<32x256xf32>
    %36 = arith.addf %32, %35 : vector<32x256xf32>
    %37 = math.tanh %36 : vector<32x256xf32>
    %c1_25 = arith.constant 1 : index
    %c0_26 = arith.constant 0 : index
    %c0_27 = arith.constant 0 : index
    %38 = vector.load %arg6[%c1_25, %c0_26, %c0_27] : memref<3x32x32xbf16, #tpu.memory_space<vmem>>, vector<1x32x32xbf16>
    %39 = vector.shape_cast %38 : vector<1x32x32xbf16> to vector<32x32xbf16>
    %40 = arith.truncf %37 : vector<32x256xf32> to vector<32x256xbf16>
    %cst_28 = arith.constant dense<0.000000e+00> : vector<32x256xf32>
    %41 = tpu.matmul %39, %40, %cst_28 {dimension_numbers = #tpu.dot_dimension_numbers<[1], [0], [0], [1], [0, 0, 1, 1], [], []>} : vector<32x32xbf16>, vector<32x256xbf16>, vector<32x256xf32> -> vector<32x256xf32>
    %c1_29 = arith.constant 1 : index
    %c0_30 = arith.constant 0 : index
    %c0_31 = arith.constant 0 : index
    %42 = vector.load %arg7[%c1_29, %c0_30, %c0_31] : memref<3x32x1xf32, #tpu.memory_space<vmem>>, vector<1x32x1xf32>
    %43 = vector.shape_cast %42 : vector<1x32x1xf32> to vector<32x1xf32>
    %44 = vector.broadcast %43 : vector<32x1xf32> to vector<32x256xf32>
    %45 = arith.addf %41, %44 : vector<32x256xf32>
    %46 = math.tanh %45 : vector<32x256xf32>
    %47 = arith.addf %46, %28 : vector<32x256xf32>
    %c2 = arith.constant 2 : index
    %c0_32 = arith.constant 0 : index
    %c0_33 = arith.constant 0 : index
    %48 = vector.load %arg4[%c2, %c0_32, %c0_33] : memref<3x32x32xbf16, #tpu.memory_space<vmem>>, vector<1x32x32xbf16>
    %49 = vector.shape_cast %48 : vector<1x32x32xbf16> to vector<32x32xbf16>
    %50 = arith.truncf %47 : vector<32x256xf32> to vector<32x256xbf16>
    %cst_34 = arith.constant dense<0.000000e+00> : vector<32x256xf32>
    %51 = tpu.matmul %49, %50, %cst_34 {dimension_numbers = #tpu.dot_dimension_numbers<[1], [0], [0], [1], [0, 0, 1, 1], [], []>} : vector<32x32xbf16>, vector<32x256xbf16>, vector<32x256xf32> -> vector<32x256xf32>
    %c2_35 = arith.constant 2 : index
    %c0_36 = arith.constant 0 : index
    %c0_37 = arith.constant 0 : index
    %52 = vector.load %arg5[%c2_35, %c0_36, %c0_37] : memref<3x32x1xf32, #tpu.memory_space<vmem>>, vector<1x32x1xf32>
    %53 = vector.shape_cast %52 : vector<1x32x1xf32> to vector<32x1xf32>
    %54 = vector.broadcast %53 : vector<32x1xf32> to vector<32x256xf32>
    %55 = arith.addf %51, %54 : vector<32x256xf32>
    %56 = math.tanh %55 : vector<32x256xf32>
    %c2_38 = arith.constant 2 : index
    %c0_39 = arith.constant 0 : index
    %c0_40 = arith.constant 0 : index
    %57 = vector.load %arg6[%c2_38, %c0_39, %c0_40] : memref<3x32x32xbf16, #tpu.memory_space<vmem>>, vector<1x32x32xbf16>
    %58 = vector.shape_cast %57 : vector<1x32x32xbf16> to vector<32x32xbf16>
    %59 = arith.truncf %56 : vector<32x256xf32> to vector<32x256xbf16>
    %cst_41 = arith.constant dense<0.000000e+00> : vector<32x256xf32>
    %60 = tpu.matmul %58, %59, %cst_41 {dimension_numbers = #tpu.dot_dimension_numbers<[1], [0], [0], [1], [0, 0, 1, 1], [], []>} : vector<32x32xbf16>, vector<32x256xbf16>, vector<32x256xf32> -> vector<32x256xf32>
    %c2_42 = arith.constant 2 : index
    %c0_43 = arith.constant 0 : index
    %c0_44 = arith.constant 0 : index
    %61 = vector.load %arg7[%c2_42, %c0_43, %c0_44] : memref<3x32x1xf32, #tpu.memory_space<vmem>>, vector<1x32x1xf32>
    %62 = vector.shape_cast %61 : vector<1x32x1xf32> to vector<32x1xf32>
    %63 = vector.broadcast %62 : vector<32x1xf32> to vector<32x256xf32>
    %64 = arith.addf %60, %63 : vector<32x256xf32>
    %65 = math.tanh %64 : vector<32x256xf32>
    %66 = arith.addf %65, %47 : vector<32x256xf32>
    %c0_45 = arith.constant 0 : index
    %c0_46 = arith.constant 0 : index
    %67 = vector.load %arg8[%c0_45, %c0_46] : memref<1x32xbf16, #tpu.memory_space<vmem>>, vector<1x32xbf16>
    %68 = arith.truncf %66 : vector<32x256xf32> to vector<32x256xbf16>
    %cst_47 = arith.constant dense<0.000000e+00> : vector<1x256xf32>
    %69 = tpu.matmul %67, %68, %cst_47 {dimension_numbers = #tpu.dot_dimension_numbers<[1], [0], [0], [1], [0, 0, 1, 1], [], []>} : vector<1x32xbf16>, vector<32x256xbf16>, vector<1x256xf32> -> vector<1x256xf32>
    %c0_48 = arith.constant 0 : index
    %c0_49 = arith.constant 0 : index
    %70 = vector.load %arg9[%c0_48, %c0_49] : memref<1x1xf32, #tpu.memory_space<vmem>>, vector<1x1xf32>
    %71 = vector.broadcast %70 : vector<1x1xf32> to vector<1x256xf32>
    %72 = arith.addf %69, %71 : vector<1x256xf32>
    %73 = arith.mulf %72, %1 : vector<1x256xf32>
    %74 = arith.mulf %73, %2 : vector<1x256xf32>
    %75 = arith.mulf %74, %3 : vector<1x256xf32>
    %cst_50 = arith.constant 1.000000e+00 : f32
    %76 = vector.broadcast %cst_50 : f32 to vector<1x256xf32>
    %77 = arith.subf %76, %1 : vector<1x256xf32>
    %78 = arith.mulf %75, %77 : vector<1x256xf32>
    %cst_51 = arith.constant 1.000000e+00 : f32
    %79 = vector.broadcast %cst_51 : f32 to vector<1x256xf32>
    %80 = arith.subf %79, %2 : vector<1x256xf32>
    %81 = arith.mulf %78, %80 : vector<1x256xf32>
    %cst_52 = arith.constant 1.000000e+00 : f32
    %82 = vector.broadcast %cst_52 : f32 to vector<1x256xf32>
    %83 = arith.addf %81, %82 : vector<1x256xf32>
    %c0_53 = arith.constant 0 : index
    %c0_54 = arith.constant 0 : index
    %84 = vector.load %arg10[%c0_53, %c0_54] : memref<1x256xf32, #tpu.memory_space<vmem>>, vector<1x256xf32>
    tpu.vector_store %arg10[%c0_53, %c0_54], %83 {strides = array<i32>} : memref<1x256xf32, #tpu.memory_space<vmem>>, vector<1x256xf32>,
    return
  }
  func.func @transform_0(%arg0: i32) -> (i32, i32) {
    %c0_i32 = arith.constant 0 : i32
    %c0_i32_0 = arith.constant 0 : i32
    return %c0_i32, %arg0 : i32, i32
  }
  func.func @transform_1(%arg0: i32) -> (i32, i32) {
    %c0_i32 = arith.constant 0 : i32
    %c0_i32_0 = arith.constant 0 : i32
    %c0_i32_1 = arith.constant 0 : i32
    return %c0_i32, %c0_i32_0 : i32, i32
  }
  func.func @transform_2(%arg0: i32) -> (i32, i32) {
    %c0_i32 = arith.constant 0 : i32
    %c0_i32_0 = arith.constant 0 : i32
    %c0_i32_1 = arith.constant 0 : i32
    return %c0_i32, %c0_i32_0 : i32, i32
  }
  func.func @transform_3(%arg0: i32) -> (i32, i32, i32) {
    %c0_i32 = arith.constant 0 : i32
    %c0_i32_0 = arith.constant 0 : i32
    %c0_i32_1 = arith.constant 0 : i32
    %c0_i32_2 = arith.constant 0 : i32
    return %c0_i32, %c0_i32_0, %c0_i32_1 : i32, i32, i32
  }
  func.func @transform_4(%arg0: i32) -> (i32, i32, i32) {
    %c0_i32 = arith.constant 0 : i32
    %c0_i32_0 = arith.constant 0 : i32
    %c0_i32_1 = arith.constant 0 : i32
    %c0_i32_2 = arith.constant 0 : i32
    return %c0_i32, %c0_i32_0, %c0_i32_1 : i32, i32, i32
  }
  func.func @transform_5(%arg0: i32) -> (i32, i32, i32) {
    %c0_i32 = arith.constant 0 : i32
    %c0_i32_0 = arith.constant 0 : i32
    %c0_i32_1 = arith.constant 0 : i32
    %c0_i32_2 = arith.constant 0 : i32
    return %c0_i32, %c0_i32_0, %c0_i32_1 : i32, i32, i32
  }
  func.func @transform_6(%arg0: i32) -> (i32, i32, i32) {
    %c0_i32 = arith.constant 0 : i32
    %c0_i32_0 = arith.constant 0 : i32
    %c0_i32_1 = arith.constant 0 : i32
    %c0_i32_2 = arith.constant 0 : i32
    return %c0_i32, %c0_i32_0, %c0_i32_1 : i32, i32, i32
  }
  func.func @transform_7(%arg0: i32) -> (i32, i32) {
    %c0_i32 = arith.constant 0 : i32
    %c0_i32_0 = arith.constant 0 : i32
    %c0_i32_1 = arith.constant 0 : i32
    return %c0_i32, %c0_i32_0 : i32, i32
  }
  func.func @transform_8(%arg0: i32) -> (i32, i32) {
    %c0_i32 = arith.constant 0 : i32
    %c0_i32_0 = arith.constant 0 : i32
    %c0_i32_1 = arith.constant 0 : i32
    return %c0_i32, %c0_i32_0 : i32, i32
  }
  func.func @transform_9(%arg0: i32) -> (i32, i32) {
    %c0_i32 = arith.constant 0 : i32
    %c0_i32_0 = arith.constant 0 : i32
    return %c0_i32, %arg0 : i32, i32
  }
}

</mosaic_0001>

<bundles_post_ra>
// kernel: tpu_custom_call.1
= control target key start
LH: loop header
LB: loop body
LE: loop exit
PB: predicated region body
PF: predicated region fallthrough
CT: control target
= control target key end

     0   :  { %s1541_s0 = inlined_call_operand.vmem [shape: f32[3,256], index: 0, kind: input, shape index: {}]   ;;  %s1542_s1 = inlined_call_operand.vmem [shape: bf16[32,3], index: 1, kind: input, shape index: {}]   ;;  %s1543_s2 = inlined_call_operand.vmem [shape: f32[32,1], index: 2, kind: input, shape index: {}]   ;;  %s1544_s3 = inlined_call_operand.vmem [shape: bf16[3,32,32], index: 3, kind: input, shape index: {}]   ;;  %s1545_s4 = inlined_call_operand.vmem [shape: f32[3,32,1], index: 4, kind: input, shape index: {}]   ;;  %s1546_s5 = inlined_call_operand.vmem [shape: bf16[3,32,32], index: 5, kind: input, shape index: {}]   ;;  %s1547_s6 = inlined_call_operand.vmem [shape: f32[3,32,1], index: 6, kind: input, shape index: {}]   ;;  %s1548_s7 = inlined_call_operand.vmem [shape: bf16[1,32], index: 7, kind: input, shape index: {}]   ;;  %s1549_s8 = inlined_call_operand.<no memory space> [shape: f32[1,1], index: 8, kind: input, shape index: {}]   ;;  %s1550_s9 = inlined_call_operand.hbm [shape: f32[1,256], index: 9, kind: output, shape index: {}]  }
   0x1   :  { %v14_v0 = vstv %s1549_s8 }
   0x2   :  { %15 = vst [vmem:[#allocation2] sm:$0x1] %v14_v0 }
   0x3   :  { %v1259_v1 = vld [vmem:[%s1541_s0] sm:$0x77]  ;;  %vm87_vm0 = vcmask 1040384   ;;  %vm88_vm1 = vcmask 1041408   ;;  %v1199_v3 = vmov 65535   ;;  %v1200_v6 = vmov 0  }
   0x4   :  { %v42_v2 = vcombine.high %v1259_v1, %v1259_v1  ;;  %v89_v4 = vsel %vm87_vm0, 4294967295, %v1199_v3  ;;  %v44_v5 = vpack.c.bf16 %v1259_v1, %v1259_v1  ;;  %129 = vmatprep.mubr.bf16.mxu0 %v1200_v6  ;;  %1062 = vset.pattern.permute.xlu0 %v1200_v6  ;;  %v46_v9 = vld [vmem:[%s1543_s2] sm:$0xff]  ;;  %v48_v11 = vld [vmem:[%s1543_s2 + $0x10] sm:$0xff]  ;;  %v47_v13 = vld [vmem:[%s1543_s2 + $0x8] sm:$0xff]  ;;  %vm80_vm2 = vcmask 23552  }
   0x5   :  { %v90_v7 = vsel %vm88_vm1, %v89_v4, 0  ;;  %1063 = vset.pattern.permute.xlu1 %v1200_v6  ;;  %231 = vmatprep.mubr.bf16.mxu1 %v1200_v6  ;;  %v49_v14 = vld [vmem:[%s1543_s2 + $0x18] sm:$0xff]  ;;  %v1065_v15 = vld [vmem:[%s1542_s1] sm:$0xff]   ;;  %v159_v17 = vld [vmem:[%s1545_s4 + $0x8] sm:$0xff] }
   0x6   :  { %v45_v8 = vpack.c.bf16 %v42_v2, %v42_v2  ;;  %v92_v10 = vand.u32 %v90_v7, %v44_v5  ;;  %52 = vperm.xlu0 %1062, %v46_v9   ;;  %62 = vperm.xlu1 %1063, %v48_v11   ;;  %v158_v16 = vld [vmem:[%s1545_s4] sm:$0xff]  ;;  %v160_v18 = vld [vmem:[%s1545_s4 + $0x10] sm:$0xff]  ;;  %v161_v19 = vld [vmem:[%s1545_s4 + $0x18] sm:$0xff] }
   0x7   :  { %v1066_v20 = vld [vmem:[%s1542_s1 + $0x8] sm:$0xff]   ;;  %v268_v21 = vld [vmem:[%s1547_s6] sm:$0xff]  ;;  %v270_v23 = vld [vmem:[%s1547_s6 + $0x10] sm:$0xff] }
   0x8   :  { %v95_v12 = vand.u32 %v90_v7, %v45_v8  ;;  %v269_v22 = vld [vmem:[%s1547_s6 + $0x8] sm:$0xff] }
   0xa   :  { %97 = vmatprep.subr.bf16.mxu0 %v95_v12  ;;  %57 = vperm.xlu0 %1062, %v47_v13  }
   0xb   :  { %98 = vmatpush1.bf16.msra.mxu0 %v92_v10  ;;  %67 = vperm.xlu1 %1063, %v49_v14  }
   0xe   :  { %999 = vmatmul.mubr.msk.bf16.vlgmr.msra.gmra.mrb[0].mxu0 %vm80_vm2, %v1065_v15  ;;  %164 = vperm.xlu0 %1062, %v158_v16  }
   0xf   :  { %139 = vmatprep.mubr.bf16.mxu0 %v1200_v6  ;;  %169 = vperm.xlu1 %1063, %v159_v17  }
  0x12   :  { %174 = vperm.xlu0 %1062, %v160_v18  }
  0x13   :  { %179 = vperm.xlu1 %1063, %v161_v19  }
  0x16   :  { %1000 = vmatmul.mubr.msk.bf16.gmra.mrb[4].mxu0 %vm80_vm2, %v1066_v20  ;;  %274 = vperm.xlu0 %1062, %v268_v21  }
  0x17   :  { %340 = vmatprep.mubr.bf16.mxu0 %v1200_v6  ;;  %279 = vperm.xlu1 %1063, %v269_v22  }
  0x18   :  { %16 = vsyncpa [#allocation4], 0  ;;  %v271_v24 = vld [vmem:[%s1547_s6 + $0x18] sm:$0xff]  ;;  %v1013_v25 = vld [vmem:[%s1545_s4 + $0x20] sm:$0xff]  ;;  %vm192_vm3 = vcmask 261120  }
  0x19   :  { %v1014_v26 = vld [vmem:[%s1545_s4 + $0x28] sm:$0xff]  ;;  %v1015_v27 = vld [vmem:[%s1545_s4 + $0x30] sm:$0xff]  ;;  %v1016_v28 = vld [vmem:[%s1545_s4 + $0x38] sm:$0xff] }
  0x1a   :  { %284 = vperm.xlu0 %1062, %v270_v23   ;;  %v1025_v29 = vld [vmem:[%s1547_s6 + $0x20] sm:$0xff]  ;;  %v1026_v30 = vld [vmem:[%s1547_s6 + $0x28] sm:$0xff]  ;;  %v1027_v31 = vld [vmem:[%s1547_s6 + $0x30] sm:$0xff] }
  0x1b   :  { %289 = vperm.xlu1 %1063, %v271_v24   ;;  %v1028_v32 = vld [vmem:[%s1547_s6 + $0x38] sm:$0xff]  ;;  %v1037_v33 = vld [vmem:[%s1545_s4 + $0x40] sm:$0xff]  ;;  %v1038_v34 = vld [vmem:[%s1545_s4 + $0x48] sm:$0xff] }
  0x1c   :  { %v1039_v35 = vld [vmem:[%s1545_s4 + $0x50] sm:$0xff]  ;;  %v1040_v36 = vld [vmem:[%s1545_s4 + $0x58] sm:$0xff]  ;;  %v1049_v37 = vld [vmem:[%s1547_s6 + $0x40] sm:$0xff] }
  0x1d   :  { %v1050_v38 = vld [vmem:[%s1547_s6 + $0x48] sm:$0xff]  ;;  %v1051_v39 = vld [vmem:[%s1547_s6 + $0x50] sm:$0xff]  ;;  %v1052_v40 = vld [vmem:[%s1547_s6 + $0x58] sm:$0xff] }
  0x1e   :  { %393 = vperm.xlu0 %1062, %v1013_v25   ;;  %v842_v41 = vld [vmem:[#allocation2] sm:$0x1]  ;;  %v1068_v4 = vld [vmem:[%s1544_s3 + $0x8] sm:$0xff]  }
  0x1f   :  { %398 = vperm.xlu1 %1063, %v1014_v26   ;;  %v1067_v3 = vld [vmem:[%s1544_s3] sm:$0xff]  }
  0x22   :  { %403 = vperm.xlu0 %1062, %v1015_v27  }
  0x23   :  { %408 = vperm.xlu1 %1063, %v1016_v28  }
  0x26   :  { %504 = vperm.xlu0 %1062, %v1025_v29  }
  0x27   :  { %509 = vperm.xlu1 %1063, %v1026_v30  }
  0x2a   :  { %514 = vperm.xlu0 %1062, %v1027_v31  }
  0x2b   :  { %519 = vperm.xlu1 %1063, %v1028_v32  }
  0x2e   :  { %623 = vperm.xlu0 %1062, %v1037_v33  }
  0x2f   :  { %628 = vperm.xlu1 %1063, %v1038_v34  }
  0x32   :  { %633 = vperm.xlu0 %1062, %v1039_v35  }
  0x33   :  { %638 = vperm.xlu1 %1063, %v1040_v36  }
  0x36   :  { %734 = vperm.xlu0 %1062, %v1049_v37  }
  0x37   :  { %739 = vperm.xlu1 %1063, %v1050_v38   ;;  %v1069_v38 = vld [vmem:[%s1546_s5] sm:$0xff]  }
  0x3a   :  { %744 = vperm.xlu0 %1062, %v1051_v39   ;;  %v1070_v39 = vld [vmem:[%s1546_s5 + $0x8] sm:$0xff]  }
  0x3b   :  { %749 = vperm.xlu1 %1063, %v1052_v40  }
  0x3e   :  { %845 = vperm.xlu0 %1062, %v842_v41  }
  0x85   :  { %v53_v42 = vpop.permute.xlu0 %52  ;;  %v63_v49 = vpop.permute.xlu1 %62 }
  0x89   :  { %v58_v45 = vpop.permute.xlu0 %57 }
  0x8a   :  { %v68_v57 = vpop.permute.xlu1 %67 }
  0x8d   :  { %v165_v5 = vpop.permute.xlu0 %164 }
  0x8e   :  { %v170_v10 = vpop.permute.xlu1 %169 }
  0x91   :  { %v175_v16 = vpop.permute.xlu0 %174 }
  0x92   :  { %v180_v20 = vpop.permute.xlu1 %179 }
  0x95   :  { %v275_v40 = vpop.permute.xlu0 %274 }
  0xe1   :  { %v131_v43 = vpop.f32.mrb[0].mxu0 }
  0xe2   :  { %v133_v44 = vpop.f32.mrb[1].mxu0  ;;  %v1369_v52 = vadd.f32 %v131_v43, %v53_v42 }
  0xe3   :  { %v135_v46 = vpop.f32.mrb[2].mxu0  ;;  %v1365_v50 = vadd.f32 %v133_v44, %v53_v42  ;;  %v280_v44 = vpop.permute.xlu1 %279 }
  0xe4   :  { %v1363_v47 = vadd.f32 %v135_v46, %v58_v45  ;;  %v137_v48 = vpop.f32.mrb[3].mxu0 }
  0xe5   :  { %v1367_v51 = vadd.f32 %v137_v48, %v58_v45 }
  0xe6   :  { %v154_v54 = vpack.c.bf16 %v1363_v47, %v1369_v52 }
  0xe7   :  { %v155_v53 = vpack.c.bf16 %v1367_v51, %v1365_v50 }
  0xe9   :  { %v141_v55 = vpop.f32.mrb[4].mxu0  ;;  %199 = vmatprep.subr.bf16.mxu1 %v155_v53 }
  0xea   :  { %v143_v56 = vpop.f32.mrb[5].mxu0  ;;  %200 = vmatpush1.bf16.msra.mxu1 %v154_v54  ;;  %v1381_v63 = vadd.f32 %v141_v55, %v63_v49  ;;  %v285_v54 = vpop.permute.xlu0 %284 }
  0xeb   :  { %v145_v58 = vpop.f32.mrb[6].mxu0  ;;  %v1377_v61 = vadd.f32 %v143_v56, %v63_v49 }
  0xec   :  { %v1375_v59 = vadd.f32 %v145_v58, %v68_v57  ;;  %v147_v60 = vpop.f32.mrb[7].mxu0  ;;  %v290_v58 = vpop.permute.xlu1 %289 }
  0xed   :  { %v1379_v62 = vadd.f32 %v147_v60, %v68_v57 }
  0xee   :  { %v156_v2 = vpack.c.bf16 %v1375_v59, %v1381_v63 }
  0xef   :  { %v157_v0 = vpack.c.bf16 %v1379_v62, %v1377_v61 }
  0xf1   :  { %201 = vmatprep.subr.bf16.mxu1 %v157_v0 }
  0xf2   :  { %202 = vmatpush1.bf16.msra.mxu1 %v156_v2 }
  0xf5   :  { %1003 = vmatmul.mubr.msk.bf16.vlgmr.msra.gmra.mrb[0].mxu1 %vm192_vm3, %v1067_v3 }
  0xf6   :  { %241 = vmatprep.mubr.bf16.mxu1 %v1200_v6 }
  0xfd   :  { %1004 = vmatmul.mubr.msk.bf16.gmra.mrb[4].mxu1 %vm192_vm3, %v1068_v4 }
  0xfe   :  { %459 = vmatprep.mubr.bf16.mxu1 %v1200_v6 }
 0x1c8   :  { %v233_v7 = vpop.f32.mrb[0].mxu1 }
 0x1c9   :  { %v234_v8 = vadd.f32 %v233_v7, %v165_v5  ;;  %v235_v9 = vpop.f32.mrb[1].mxu1 }
 0x1ca   :  { %v236_v11 = vadd.f32 %v235_v9, %v165_v5  ;;  %v237_v12 = vpop.f32.mrb[2].mxu1 }
 0x1cb   :  { %1079 = vtanh.f32 %v234_v8  ;;  %v238_v13 = vadd.f32 %v237_v12, %v170_v10  ;;  %v239_v14 = vpop.f32.mrb[3].mxu1 }
 0x1cc   :  { %1081 = vtanh.f32 %v236_v11  ;;  %v240_v15 = vadd.f32 %v239_v14, %v170_v10 }
 0x1cd   :  { %1083 = vtanh.f32 %v238_v13 }
 0x1ce   :  { %1085 = vtanh.f32 %v240_v15 }
 0x1d0   :  { %v243_v17 = vpop.f32.mrb[4].mxu1 }
 0x1d1   :  { %v244_v18 = vadd.f32 %v243_v17, %v175_v16  ;;  %v245_v19 = vpop.f32.mrb[5].mxu1 }
 0x1d2   :  { %v246_v21 = vadd.f32 %v245_v19, %v175_v16  ;;  %v247_v22 = vpop.f32.mrb[6].mxu1 }
 0x1d3   :  { %1087 = vtanh.f32 %v244_v18  ;;  %v248_v23 = vadd.f32 %v247_v22, %v180_v20  ;;  %v249_v24 = vpop.f32.mrb[7].mxu1 }
 0x1d4   :  { %1089 = vtanh.f32 %v246_v21  ;;  %v250_v25 = vadd.f32 %v249_v24, %v180_v20  ;;  %v399_v24 = vpop.permute.xlu1 %398 }
 0x1d5   :  { %v1080_v26 = vpop.eup %1079  ;;  %1091 = vtanh.f32 %v248_v23 }
 0x1d6   :  { %v1082_v27 = vpop.eup %1081  ;;  %1093 = vtanh.f32 %v250_v25 }
 0x1d7   :  { %v1084_v28 = vpop.eup %1083 }
 0x1d8   :  { %v1086_v29 = vpop.eup %1085  ;;  %v264_v30 = vpack.c.bf16 %v1084_v28, %v1080_v26 }
 0x1d9   :  { %v265_v31 = vpack.c.bf16 %v1086_v29, %v1082_v27 }
 0x1db   :  { %308 = vmatprep.subr.bf16.mxu0 %v265_v31 }
 0x1dc   :  { %309 = vmatpush1.bf16.msra.mxu0 %v264_v30 }
 0x1dd   :  { %v1088_v32 = vpop.eup %1087 }
 0x1de   :  { %v1090_v33 = vpop.eup %1089 }
 0x1df   :  { %v1092_v34 = vpop.eup %1091 }
 0x1e0   :  { %v1094_v35 = vpop.eup %1093  ;;  %v266_v36 = vpack.c.bf16 %v1092_v34, %v1088_v32  ;;  %v409_v34 = vpop.permute.xlu1 %408 }
 0x1e1   :  { %v267_v37 = vpack.c.bf16 %v1094_v35, %v1090_v33 }
 0x1e3   :  { %310 = vmatprep.subr.bf16.mxu0 %v267_v37 }
 0x1e4   :  { %311 = vmatpush1.bf16.msra.mxu0 %v266_v36 }
 0x1e7   :  { %1007 = vmatmul.mubr.msk.bf16.vlgmr.msra.gmra.mrb[8].mxu0 %vm192_vm3, %v1069_v38 }
 0x1e8   :  { %350 = vmatprep.mubr.bf16.mxu0 %v1200_v6 }
 0x1ef   :  { %1008 = vmatmul.mubr.msk.bf16.gmra.mrb[12].mxu0 %vm192_vm3, %v1070_v39 }
 0x1f0   :  { %570 = vmatprep.mubr.bf16.mxu0 %v1200_v6 }
 0x2ba   :  { %v342_v41 = vpop.f32.mrb[8].mxu0 }
 0x2bb   :  { %v343_v42 = vadd.f32 %v342_v41, %v275_v40  ;;  %v344_v43 = vpop.f32.mrb[9].mxu0 }
 0x2bc   :  { %v345_v45 = vadd.f32 %v344_v43, %v275_v40  ;;  %v346_v46 = vpop.f32.mrb[10].mxu0 }
 0x2bd   :  { %1095 = vtanh.f32 %v343_v42  ;;  %v347_v48 = vadd.f32 %v346_v46, %v280_v44  ;;  %v348_v49 = vpop.f32.mrb[11].mxu0 }
 0x2be   :  { %1097 = vtanh.f32 %v345_v45  ;;  %v349_v53 = vadd.f32 %v348_v49, %v280_v44 }
 0x2bf   :  { %1099 = vtanh.f32 %v347_v48 }
 0x2c0   :  { %1101 = vtanh.f32 %v349_v53 }
 0x2c2   :  { %v352_v55 = vpop.f32.mrb[12].mxu0 }
 0x2c3   :  { %v353_v56 = vadd.f32 %v352_v55, %v285_v54  ;;  %v354_v57 = vpop.f32.mrb[13].mxu0 }
 0x2c4   :  { %v355_v60 = vadd.f32 %v354_v57, %v285_v54  ;;  %v356_v0 = vpop.f32.mrb[14].mxu0  ;;  %v1074_v57 = vld [vmem:[%s1546_s5 + $0x18] sm:$0xff]  }
 0x2c5   :  { %1103 = vtanh.f32 %v353_v56  ;;  %v357_v2 = vadd.f32 %v356_v0, %v290_v58  ;;  %v358_v3 = vpop.f32.mrb[15].mxu0  ;;  %v1073_v56 = vld [vmem:[%s1546_s5 + $0x10] sm:$0xff]  }
 0x2c6   :  { %1105 = vtanh.f32 %v355_v60  ;;  %v359_v4 = vadd.f32 %v358_v3, %v290_v58  ;;  %v510_v3 = vpop.permute.xlu1 %509 }
 0x2c7   :  { %v1096_v5 = vpop.eup %1095  ;;  %1107 = vtanh.f32 %v357_v2 }
 0x2c8   :  { %v1098_v7 = vpop.eup %1097  ;;  %1109 = vtanh.f32 %v359_v4  ;;  %v1417_v13 = vadd.f32 %v1096_v5, %v1369_v52 }
 0x2c9   :  { %v1100_v8 = vpop.eup %1099  ;;  %v1411_v11 = vadd.f32 %v1098_v7, %v1365_v50 }
 0x2ca   :  { %v1102_v9 = vpop.eup %1101  ;;  %v1408_v10 = vadd.f32 %v1100_v8, %v1363_v47 }
 0x2cb   :  { %v1414_v12 = vadd.f32 %v1102_v9, %v1367_v51 }
 0x2cc   :  { %v382_v15 = vpack.c.bf16 %v1408_v10, %v1417_v13 }
 0x2cd   :  { %v383_v14 = vpack.c.bf16 %v1414_v12, %v1411_v11 }
 0x2cf   :  { %v1104_v16 = vpop.eup %1103  ;;  %427 = vmatprep.subr.bf16.mxu1 %v383_v14 }
 0x2d0   :  { %v1106_v17 = vpop.eup %1105  ;;  %428 = vmatpush1.bf16.msra.mxu1 %v382_v15  ;;  %v1433_v19 = vadd.f32 %v1104_v16, %v1381_v63 }
 0x2d1   :  { %v1108_v47 = vpop.eup %1107  ;;  %v1427_v51 = vadd.f32 %v1106_v17, %v1377_v61  ;;  %v1072_v61 = vld [vmem:[%s1544_s3 + $0x18] sm:$0xff]  }
 0x2d2   :  { %v1110_v18 = vpop.eup %1109  ;;  %v1424_v50 = vadd.f32 %v1108_v47, %v1375_v59  ;;  %v1071_v59 = vld [vmem:[%s1544_s3 + $0x10] sm:$0xff]   ;;  %v520_v47 = vpop.permute.xlu1 %519 }
 0x2d3   :  { %v1430_v52 = vadd.f32 %v1110_v18, %v1379_v62  ;;  %v394_v62 = vpop.permute.xlu0 %393 }
 0x2d4   :  { %v384_v21 = vpack.c.bf16 %v1424_v50, %v1433_v19 }
 0x2d5   :  { %v385_v20 = vpack.c.bf16 %v1430_v52, %v1427_v51 }
 0x2d7   :  { %429 = vmatprep.subr.bf16.mxu1 %v385_v20  ;;  %v404_v30 = vpop.permute.xlu0 %403 }
 0x2d8   :  { %430 = vmatpush1.bf16.msra.mxu1 %v384_v21 }
 0x2db   :  { %1019 = vmatmul.mubr.msk.bf16.vlgmr.msra.gmra.mrb[8].mxu1 %vm192_vm3, %v1071_v59  ;;  %v505_v58 = vpop.permute.xlu0 %504 }
 0x2dc   :  { %469 = vmatprep.mubr.bf16.mxu1 %v1200_v6 }
 0x2df   :  { %v515_v14 = vpop.permute.xlu0 %514 }
 0x2e3   :  { %1020 = vmatmul.mubr.msk.bf16.gmra.mrb[12].mxu1 %vm192_vm3, %v1072_v61 }
 0x2e4   :  { %689 = vmatprep.mubr.bf16.mxu1 %v1200_v6 }
 0x3ae   :  { %v461_v63 = vpop.f32.mrb[8].mxu1 }
 0x3af   :  { %v462_v22 = vadd.f32 %v461_v63, %v394_v62  ;;  %v463_v23 = vpop.f32.mrb[9].mxu1 }
 0x3b0   :  { %v464_v25 = vadd.f32 %v463_v23, %v394_v62  ;;  %v465_v26 = vpop.f32.mrb[10].mxu1 }
 0x3b1   :  { %1111 = vtanh.f32 %v462_v22  ;;  %v466_v27 = vadd.f32 %v465_v26, %v399_v24  ;;  %v467_v28 = vpop.f32.mrb[11].mxu1 }
 0x3b2   :  { %1113 = vtanh.f32 %v464_v25  ;;  %v468_v29 = vadd.f32 %v467_v28, %v399_v24 }
 0x3b3   :  { %1115 = vtanh.f32 %v466_v27 }
 0x3b4   :  { %1117 = vtanh.f32 %v468_v29 }
 0x3b6   :  { %v471_v31 = vpop.f32.mrb[12].mxu1 }
 0x3b7   :  { %v472_v32 = vadd.f32 %v471_v31, %v404_v30  ;;  %v473_v33 = vpop.f32.mrb[13].mxu1 }
 0x3b8   :  { %v474_v35 = vadd.f32 %v473_v33, %v404_v30  ;;  %v475_v36 = vpop.f32.mrb[14].mxu1 }
 0x3b9   :  { %1119 = vtanh.f32 %v472_v32  ;;  %v476_v37 = vadd.f32 %v475_v36, %v409_v34  ;;  %v477_v38 = vpop.f32.mrb[15].mxu1 }
 0x3ba   :  { %1121 = vtanh.f32 %v474_v35  ;;  %v478_v39 = vadd.f32 %v477_v38, %v409_v34  ;;  %v629_v38 = vpop.permute.xlu1 %628 }
 0x3bb   :  { %v1112_v40 = vpop.eup %1111  ;;  %1123 = vtanh.f32 %v476_v37 }
 0x3bc   :  { %v1114_v41 = vpop.eup %1113  ;;  %1125 = vtanh.f32 %v478_v39 }
 0x3bd   :  { %v1116_v42 = vpop.eup %1115 }
 0x3be   :  { %v1118_v43 = vpop.eup %1117  ;;  %v493_v44 = vpack.c.bf16 %v1116_v42, %v1112_v40 }
 0x3bf   :  { %v494_v45 = vpack.c.bf16 %v1118_v43, %v1114_v41 }
 0x3c1   :  { %538 = vmatprep.subr.bf16.mxu0 %v494_v45 }
 0x3c2   :  { %539 = vmatpush1.bf16.msra.mxu0 %v493_v44 }
 0x3c3   :  { %v1120_v46 = vpop.eup %1119 }
 0x3c4   :  { %v1122_v48 = vpop.eup %1121 }
 0x3c5   :  { %v1124_v49 = vpop.eup %1123 }
 0x3c6   :  { %v1126_v53 = vpop.eup %1125  ;;  %v495_v54 = vpack.c.bf16 %v1124_v49, %v1120_v46  ;;  %v639_v49 = vpop.permute.xlu1 %638 }
 0x3c7   :  { %v496_v55 = vpack.c.bf16 %v1126_v53, %v1122_v48 }
 0x3c9   :  { %540 = vmatprep.subr.bf16.mxu0 %v496_v55 }
 0x3ca   :  { %541 = vmatpush1.bf16.msra.mxu0 %v495_v54 }
 0x3cd   :  { %1031 = vmatmul.mubr.msk.bf16.vlgmr.msra.gmra.mrb[16].mxu0 %vm192_vm3, %v1073_v56 }
 0x3ce   :  { %580 = vmatprep.mubr.bf16.mxu0 %v1200_v6 }
 0x3d5   :  { %1032 = vmatmul.mubr.msk.bf16.gmra.mrb[20].mxu0 %vm192_vm3, %v1074_v57 }
 0x3d6   :  { %800 = vmatprep.mubr.bf16.mxu0 %v1200_v6 }
 0x4a0   :  { %v572_v60 = vpop.f32.mrb[16].mxu0 }
 0x4a1   :  { %v573_v0 = vadd.f32 %v572_v60, %v505_v58  ;;  %v574_v2 = vpop.f32.mrb[17].mxu0 }
 0x4a2   :  { %v575_v4 = vadd.f32 %v574_v2, %v505_v58  ;;  %v576_v5 = vpop.f32.mrb[18].mxu0 }
 0x4a3   :  { %1127 = vtanh.f32 %v573_v0  ;;  %v577_v7 = vadd.f32 %v576_v5, %v510_v3  ;;  %v578_v8 = vpop.f32.mrb[19].mxu0 }
 0x4a4   :  { %1129 = vtanh.f32 %v575_v4  ;;  %v579_v9 = vadd.f32 %v578_v8, %v510_v3 }
 0x4a5   :  { %1131 = vtanh.f32 %v577_v7 }
 0x4a6   :  { %1133 = vtanh.f32 %v579_v9 }
 0x4a8   :  { %v582_v15 = vpop.f32.mrb[20].mxu0 }
 0x4a9   :  { %v583_v16 = vadd.f32 %v582_v15, %v515_v14  ;;  %v584_v17 = vpop.f32.mrb[21].mxu0 }
 0x4aa   :  { %v585_v18 = vadd.f32 %v584_v17, %v515_v14  ;;  %v586_v20 = vpop.f32.mrb[22].mxu0  ;;  %v1078_v17 = vld [vmem:[%s1546_s5 + $0x28] sm:$0xff]  }
 0x4ab   :  { %1135 = vtanh.f32 %v583_v16  ;;  %v587_v21 = vadd.f32 %v586_v20, %v520_v47  ;;  %v588_v59 = vpop.f32.mrb[23].mxu0  ;;  %v1077_v16 = vld [vmem:[%s1546_s5 + $0x20] sm:$0xff]  }
 0x4ac   :  { %1137 = vtanh.f32 %v585_v18  ;;  %v589_v61 = vadd.f32 %v588_v59, %v520_v47  ;;  %v740_v59 = vpop.permute.xlu1 %739 }
 0x4ad   :  { %v1128_v62 = vpop.eup %1127  ;;  %1139 = vtanh.f32 %v587_v21 }
 0x4ae   :  { %v1130_v63 = vpop.eup %1129  ;;  %1141 = vtanh.f32 %v589_v61  ;;  %v1469_v27 = vadd.f32 %v1128_v62, %v1417_v13 }
 0x4af   :  { %v1132_v22 = vpop.eup %1131  ;;  %v1463_v25 = vadd.f32 %v1130_v63, %v1411_v11 }
 0x4b0   :  { %v1134_v23 = vpop.eup %1133  ;;  %v1460_v24 = vadd.f32 %v1132_v22, %v1408_v10 }
 0x4b1   :  { %v1466_v26 = vadd.f32 %v1134_v23, %v1414_v12 }
 0x4b2   :  { %v612_v29 = vpack.c.bf16 %v1460_v24, %v1469_v27 }
 0x4b3   :  { %v613_v28 = vpack.c.bf16 %v1466_v26, %v1463_v25 }
 0x4b5   :  { %v1136_v30 = vpop.eup %1135  ;;  %657 = vmatprep.subr.bf16.mxu1 %v613_v28 }
 0x4b6   :  { %v1138_v31 = vpop.eup %1137  ;;  %658 = vmatpush1.bf16.msra.mxu1 %v612_v29  ;;  %v1485_v33 = vadd.f32 %v1136_v30, %v1433_v19 }
 0x4b7   :  { %v1140_v10 = vpop.eup %1139  ;;  %v1479_v12 = vadd.f32 %v1138_v31, %v1427_v51  ;;  %v1076_v51 = vld [vmem:[%s1544_s3 + $0x28] sm:$0xff]   ;;  %v750_v31 = vpop.permute.xlu1 %749 }
 0x4b8   :  { %v1142_v32 = vpop.eup %1141  ;;  %v1476_v11 = vadd.f32 %v1140_v10, %v1424_v50  ;;  %v1075_v50 = vld [vmem:[%s1544_s3 + $0x20] sm:$0xff]  }
 0x4b9   :  { %v1482_v13 = vadd.f32 %v1142_v32, %v1430_v52  ;;  %v624_v52 = vpop.permute.xlu0 %623 }
 0x4ba   :  { %v614_v35 = vpack.c.bf16 %v1476_v11, %v1485_v33 }
 0x4bb   :  { %v615_v34 = vpack.c.bf16 %v1482_v13, %v1479_v12 }
 0x4bd   :  { %659 = vmatprep.subr.bf16.mxu1 %v615_v34  ;;  %v634_v44 = vpop.permute.xlu0 %633 }
 0x4be   :  { %660 = vmatpush1.bf16.msra.mxu1 %v614_v35 }
 0x4c1   :  { %1043 = vmatmul.mubr.msk.bf16.vlgmr.msra.gmra.mrb[16].mxu1 %vm192_vm3, %v1075_v50  ;;  %v735_v47 = vpop.permute.xlu0 %734 }
 0x4c2   :  { %699 = vmatprep.mubr.bf16.mxu1 %v1200_v6 }
 0x4c9   :  { %1044 = vmatmul.mubr.msk.bf16.gmra.mrb[20].mxu1 %vm192_vm3, %v1076_v51 }
 0x4ca   :  { %887 = vmatprep.mubr.bf16.mxu1 %v1200_v6 }
 0x594   :  { %v691_v19 = vpop.f32.mrb[16].mxu1 }
 0x595   :  { %v692_v36 = vadd.f32 %v691_v19, %v624_v52  ;;  %v693_v37 = vpop.f32.mrb[17].mxu1 }
 0x596   :  { %v694_v39 = vadd.f32 %v693_v37, %v624_v52  ;;  %v695_v40 = vpop.f32.mrb[18].mxu1 }
 0x597   :  { %1143 = vtanh.f32 %v692_v36  ;;  %v696_v41 = vadd.f32 %v695_v40, %v629_v38  ;;  %v697_v42 = vpop.f32.mrb[19].mxu1 }
 0x598   :  { %1145 = vtanh.f32 %v694_v39  ;;  %v698_v43 = vadd.f32 %v697_v42, %v629_v38 }
 0x599   :  { %1147 = vtanh.f32 %v696_v41 }
 0x59a   :  { %1149 = vtanh.f32 %v698_v43 }
 0x59c   :  { %v701_v45 = vpop.f32.mrb[20].mxu1 }
 0x59d   :  { %v702_v46 = vadd.f32 %v701_v45, %v634_v44  ;;  %v703_v48 = vpop.f32.mrb[21].mxu1 }
 0x59e   :  { %v704_v53 = vadd.f32 %v703_v48, %v634_v44  ;;  %v705_v54 = vpop.f32.mrb[22].mxu1 }
 0x59f   :  { %1151 = vtanh.f32 %v702_v46  ;;  %v706_v55 = vadd.f32 %v705_v54, %v639_v49  ;;  %v707_v56 = vpop.f32.mrb[23].mxu1  ;;  %v848_v54 = vlaneseq }
 0x5a0   :  { %1153 = vtanh.f32 %v704_v53  ;;  %v708_v57 = vadd.f32 %v707_v56, %v639_v49 }
 0x5a1   :  { %v1144_v58 = vpop.eup %1143  ;;  %1155 = vtanh.f32 %v706_v55  ;;  %v849_v55 = vshrl.u32 %v848_v54, 7  ;;  %vm980_vm4 = vcmp.lt.s32.totalorder %v848_v54, 256 }
 0x5a2   :  { %v1146_v60 = vpop.eup %1145  ;;  %1157 = vtanh.f32 %v708_v57 }
 0x5a3   :  { %v1148_v0 = vpop.eup %1147  ;;  %v850_v56 = vsub.s32 0, %v849_v55  ;;  %v902_v57 = vsub.s32 4, %v849_v55 }
 0x5a4   :  { %v1150_v2 = vpop.eup %1149  ;;  %v723_v3 = vpack.c.bf16 %v1148_v0, %v1144_v58  ;;  %v914_v58 = vsub.s32 5, %v849_v55 }
 0x5a5   :  { %v724_v4 = vpack.c.bf16 %v1150_v2, %v1146_v60  ;;  %v922_v60 = vsub.s32 2, %v849_v55  ;;  %v903_v2 = vrot.slane %v1259_v1, %v902_v57 }
 0x5a7   :  { %768 = vmatprep.subr.bf16.mxu0 %v724_v4  ;;  %v932_v4 = vsub.f32 1.0, %v1259_v1 }
 0x5a8   :  { %769 = vmatpush1.bf16.msra.mxu0 %v723_v3  ;;  %v926_v3 = vsub.s32 6, %v849_v55 }
 0x5a9   :  { %v1152_v5 = vpop.eup %1151 }
 0x5aa   :  { %v1154_v7 = vpop.eup %1153 }
 0x5ab   :  { %v1156_v8 = vpop.eup %1155 }
 0x5ac   :  { %v1158_v9 = vpop.eup %1157  ;;  %v725_v14 = vpack.c.bf16 %v1156_v8, %v1152_v5 }
 0x5ad   :  { %v726_v15 = vpack.c.bf16 %v1158_v9, %v1154_v7 }
 0x5af   :  { %770 = vmatprep.subr.bf16.mxu0 %v726_v15 }
 0x5b0   :  { %771 = vmatpush1.bf16.msra.mxu0 %v725_v14  ;;  %v915_v14 = vrot.slane %v1259_v1, %v914_v58 }
 0x5b3   :  { %1055 = vmatmul.mubr.msk.bf16.vlgmr.msra.gmra.mrb[24].mxu0 %vm192_vm3, %v1077_v16 }
 0x5b4   :  { %810 = vmatprep.mubr.bf16.mxu0 %v1200_v6  ;;  %v745_v6 = vpop.permute.xlu0 %744 }
 0x5bb   :  { %1056 = vmatmul.mubr.msk.bf16.gmra.mrb[28].mxu0 %vm192_vm3, %v1078_v17  ;;  %v923_v17 = vrot.slane %v1259_v1, %v922_v60 }
 0x686   :  { %v802_v18 = vpop.f32.mrb[24].mxu0 }
 0x687   :  { %v803_v20 = vadd.f32 %v802_v18, %v735_v47  ;;  %v804_v21 = vpop.f32.mrb[25].mxu0 }
 0x688   :  { %v805_v61 = vadd.f32 %v804_v21, %v735_v47  ;;  %v806_v62 = vpop.f32.mrb[26].mxu0  ;;  %v937_v21 = vrot.slane %v932_v4, %v850_v56 }
 0x689   :  { %1159 = vtanh.f32 %v803_v20  ;;  %v807_v63 = vadd.f32 %v806_v62, %v740_v59  ;;  %v808_v22 = vpop.f32.mrb[27].mxu0  ;;  %v927_v20 = vrot.slane %v1259_v1, %v926_v3  ;;  %v941_v62 = vrot.slane %v932_v4, %v902_v57 }
 0x68a   :  { %1161 = vtanh.f32 %v805_v61  ;;  %v809_v23 = vadd.f32 %v808_v22, %v740_v59 }
 0x68b   :  { %1163 = vtanh.f32 %v807_v63  ;;  %v1201_v63 = vmov 1966171168  }
 0x68c   :  { %1165 = vtanh.f32 %v809_v23  ;;  %v964_v22 = vunpack.c.l.s4 %v1201_v63 }
 0x68e   :  { %v812_v28 = vpop.f32.mrb[28].mxu0 }
 0x68f   :  { %v813_v29 = vadd.f32 %v812_v28, %v745_v6  ;;  %v814_v30 = vpop.f32.mrb[29].mxu0 }
 0x690   :  { %v815_v10 = vadd.f32 %v814_v30, %v745_v6  ;;  %v816_v32 = vpop.f32.mrb[30].mxu0 }
 0x691   :  { %1167 = vtanh.f32 %v813_v29  ;;  %v817_v34 = vadd.f32 %v816_v32, %v750_v31  ;;  %v818_v35 = vpop.f32.mrb[31].mxu0  ;;  %v953_v29 = vrot.slane %v932_v4, %v914_v58 }
 0x692   :  { %1169 = vtanh.f32 %v815_v10  ;;  %v819_v50 = vadd.f32 %v818_v35, %v750_v31  ;;  %v965_v10 = vunpack.c.0.s8 %v964_v22 }
 0x693   :  { %v1160_v51 = vpop.eup %1159  ;;  %1171 = vtanh.f32 %v817_v34 }
 0x694   :  { %v1162_v52 = vpop.eup %1161  ;;  %1173 = vtanh.f32 %v819_v50  ;;  %v829_v37 = vadd.f32 %v1160_v51, %v1469_v27  ;;  %v968_v51 = vsub.s32 %v965_v10, %v849_v55 }
 0x695   :  { %v1164_v19 = vpop.eup %1163  ;;  %v830_v39 = vadd.f32 %v1162_v52, %v1463_v25 }
 0x696   :  { %v1166_v36 = vpop.eup %1165  ;;  %v831_v38 = vadd.f32 %v1164_v19, %v1460_v24 }
 0x697   :  { %v832_v40 = vadd.f32 %v1166_v36, %v1466_v26  ;;  %v837_v26 = vld [vmem:[%s1548_s7] sm:$0x1]  ;;  %s1202_s7 = smov [#allocation3]  }
 0x698   :  { %v838_v41 = vpack.c.bf16 %v831_v38, %v829_v37  ;;  %s989_s18 = sshll.u32 %s1202_s7, 4  ;;  %s990_s18 = int_to_ptr.vmem [resolvable:$true] %s989_s18 }
 0x699   :  { %v839_v42 = vpack.c.bf16 %v832_v40, %v830_v39  ;;  %s1175_s19 = scalar_lea.vmem %s990_s18, 32  ;;  %p1180_p1 = scmp.lt.s32.totalorder %s990_s18, %s990_s18 }
 0x69a   :  { %p1176_p0 = scmp.ne.s32.totalorder %s990_s18, %s1175_s19  ;;  %p1181_p2 = scmp.lt.s32.totalorder %s1175_s19, %s1175_s19 }
 0x69b   :  { %v1168_v43 = vpop.eup %1167  ;;  %855 = vmatprep.subr.bf16.mxu1 %v839_v42 }
 0x69c   :  { %v1170_v44 = vpop.eup %1169  ;;  %856 = vmatpush1.bf16.msra.mxu1 %v838_v41  ;;  %v833_v48 = vadd.f32 %v1168_v43, %v1485_v33  ;;  %v846_v33 = vpop.permute.xlu0 %845  ;;  %p1182_p3 = por %p1181_p2, %p1180_p1 }
 0x69d   :  { %v1172_v45 = vpop.eup %1171  ;;  %v834_v27 = vadd.f32 %v1170_v44, %v1479_v12  ;;  %v851_v12 = vrot.slane %v846_v33, %v850_v56 }
 0x69e   :  { %v1174_v46 = vpop.eup %1173  ;;  %v835_v49 = vadd.f32 %v1172_v45, %v1476_v11  ;;  %v910_v11 = vsub.s32 1, %v849_v55  ;;  %p1183_p4 = pnand %p1182_p3, %p1176_p0 }
 0x69f   :  { %v836_v24 = vadd.f32 %v1174_v46, %v1482_v13  ;;  %v899_v13 = vrot.slane %v1259_v1, %v850_v56 }
 0x6a0   :  { %v840_v53 = vpack.c.bf16 %v835_v49, %v833_v48  ;;  %v911_v7 = vrot.slane %v1259_v1, %v910_v11  ;;  %v949_v6 = vrot.slane %v932_v4, %v910_v11 }
 0x6a1   :  { %v841_v25 = vpack.c.bf16 %v836_v24, %v834_v27 }
 0x6a3   :  { %857 = vmatprep.subr.bf16.mxu1 %v841_v25 }
 0x6a4   :  { %858 = vmatpush1.bf16.msra.mxu1 %v840_v53 }
 0x6a7   :  { %1057 = vmatmul.mubr.msk.bf16.vlgmr.msra.gmra.mrb[24].mxu1 %vm192_vm3, %v837_v26 }
 0x77a   :  { %v889_v0 = vpop.f32.mrb[24].mxu1 }
 0x77b   :  { %v890_v5 = vadd.f32 %v889_v0, %v851_v12  ;;  %v891_v8 = vpop.f32.mrb[25].mxu1 }
 0x77c   :  { %v892_v9 = vadd.f32 %v891_v8, %v851_v12  ;;  %v893_v15 = vpop.f32.mrb[26].mxu1 }
 0x77d   :  { %v906_v16 = vmul.f32 %v899_v13, %v890_v5  ;;  %v894_v47 = vpop.f32.mrb[27].mxu1 }
 0x77e   :  { %v907_v18 = vmul.f32 %v903_v2, %v892_v9 }
 0x77f   :  { %v918_v59 = vmul.f32 %v911_v7, %v906_v16 }
 0x780   :  { %v919_v61 = vmul.f32 %v915_v14, %v907_v18 }
 0x781   :  { %v930_v23 = vmul.f32 %v923_v17, %v918_v59 }
 0x782   :  { %v931_v28 = vmul.f32 %v927_v20, %v919_v61 }
 0x783   :  { %v944_v30 = vmul.f32 %v937_v21, %v930_v23 }
 0x784   :  { %v945_v31 = vmul.f32 %v941_v62, %v931_v28 }
 0x785   :  { %v956_v32 = vmul.f32 %v949_v6, %v944_v30 }
 0x786   :  { %v957_v34 = vmul.f32 %v953_v29, %v945_v31 }
 0x787   :  { %v958_v35 = vadd.f32 1.0, %v956_v32 }
 0x788   :  { %v959_v50 = vadd.f32 1.0, %v957_v34 }
 0x78a   :  { %v962_v52 = vcombine.low %v958_v35, %v959_v50 }
 0x78c   :  { %v969_v1 = vrot.slane %v962_v52, %v968_v51 }
 0x78e   :  { %v976_v19 = vrot.slane %v969_v1, %v968_v51 }
 0x790   :  { %982 = vst.msk [vmem:[#allocation3] sm:$0x3] %vm980_vm4, %v976_v19 }
 0x791   :  { %1186 = shalt.err (!%p1183_p4)
}
 0x792   :  { %s1187_s6 = scalar_lea.hbm %s1550_s9, 32 }
 0x793   :  { %p1188_p5 = scmp.ne.s32.totalorder %s1550_s9, %s1187_s6  ;;  %p1191_p6 = scmp.lt.u32.totalorder %s1187_s6, %s1550_s9 }
 0x795   :  { %p1193_p7 = pnand %p1191_p6, %p1188_p5 }
 0x797   :  { %1196 = shalt.err (!%p1193_p7)
}
 0x798   :  { %992 = dma.vmem_to_hbm [thread:$0]  %s990_s18, 32, %s1550_s9, [#allocation4]  }
 0x799   :  { %1197 = dma.done.wait [#allocation4], 32  }
 0x79a   :  { %1198 = vsyncadd [#allocation4], 4294967264 }
 0x79b   :  { %996 = vsyncpa [#allocation4], 1 }

</bundles_post_ra>
